<compile_context>
chip_gen: v6e
topology: v6e:2x2x1
jax: 0.10.0
libtpu: 0.0.40
codegen_flags: <defaults>
</compile_context>

<pallas_src>
import functools

import jax
import jax.numpy as jnp
from jax.experimental import pallas as pl
from jax.experimental.pallas import tpu as pltpu

F32 = jnp.float32
BF16 = jnp.bfloat16


# --------------------------------------------------------------------------
# Generation-aware sizing
# --------------------------------------------------------------------------
@functools.lru_cache(maxsize=None)
def _tpu_config():
    vmem_bytes = 64 * 1024 * 1024                 # conservative default (v7x)
    kind = ""
    try:
        kind = jax.devices()[0].device_kind.lower()
    except Exception:
        pass
    try:
        vmem_bytes = int(pltpu.get_tpu_info().vmem_capacity_bytes)
    except Exception:
        pass
    big_vmem = vmem_bytes >= 100 * 1024 * 1024    # v5e / v6e: 128 MiB parts
    return dict(
        b_tile=1024,                              # small per-row kernels
        b_tile_meta=1024 if big_vmem else 512,    # meta kernel has bigger slabs
        vmem_limit=(64 if big_vmem else 32) * 1024 * 1024,
        # v5e has no bf16 VALU -> keep the wide elementwise products in f32.
        ew_dtype=F32 if "v5" in kind else BF16,
    )


def _compiler_params():
    return pltpu.CompilerParams(
        dimension_semantics=("parallel",),
        vmem_limit_bytes=_tpu_config()["vmem_limit"],
    )


# --------------------------------------------------------------------------
# Small helpers
# --------------------------------------------------------------------------
def _round_up(n, m):
    return ((n + m - 1) // m) * m


def _pick_tile(B, cap):
    """Largest tile <= cap that is a multiple of 128 (lane-dense score slab)
    without over-padding tiny batches."""
    return int(min(cap, _round_up(B, 128)))


def _pad_rows(a, rows):
    pad = rows - a.shape[0]
    if pad == 0:
        return a
    return jnp.pad(a, ((0, pad),) + ((0, 0),) * (a.ndim - 1))


def _row_spec(shape, tile):
    """Activation spec: tile the leading (batch) dim, full trailing dims."""
    nd = len(shape)
    block = (tile,) + tuple(shape[1:])
    return pl.BlockSpec(block, lambda i: (i,) + (0,) * (nd - 1))


def _const_spec(shape):
    """Weight spec: identical full-array block every step (stays resident)."""
    nd = len(shape)
    return pl.BlockSpec(tuple(shape), lambda i: (0,) * nd)


def _out_row_spec(tile):
    # (1, tile) lane-dense score slab; block index walks along lanes.
    return pl.BlockSpec((1, tile), lambda i: (0, i))


def _linear_nt(x, w, b=None):
    """y = x @ w.T (+ b) with torch Linear weight layout (out, in), f32 accum.

    Contraction is last-dim vs last-dim so Mosaic feeds the MXU with the
    transposed operand directly (no in-kernel XLU transpose)."""
    y = jax.lax.dot_general(
        x.astype(w.dtype), w,
        dimension_numbers=(((1,), (1,)), ((), ())),
        preferred_element_type=F32)
    if b is not None:
        y = y + b.astype(F32)
    return y


def _rowsum_to_lanes(out_ref, prod):
    """prod: (B_tile, D) f32.  Write sum over D as a (1, B_tile) lane-dense row
    using an MXU contraction with a ones row (no XLU transpose, unmasked vst)."""
    ones_row = jnp.ones((1, prod.shape[1]), F32)
    out_ref[...] = jax.lax.dot_general(
        ones_row, prod,
        dimension_numbers=(((1,), (1,)), ((), ())),
        preferred_element_type=F32)


# --------------------------------------------------------------------------
# Kernel 1: DNNBase forward  ->  sum(Linear(uid_emb) * iid_emb, -1)
# --------------------------------------------------------------------------
def dnn_base_kernel(uid_ref, iid_ref, w_ref, b_ref, out_ref):
    lin = _linear_nt(uid_ref[...], w_ref[...], b_ref[...])          # (Bt,D) f32
    prod = lin * iid_ref[...].astype(F32)
    _rowsum_to_lanes(out_ref, prod)


def dnn_base_call(uid_emb, iid_emb, w, b):
    cfg = _tpu_config()
    B, D = uid_emb.shape
    bt = _pick_tile(B, cfg["b_tile"])
    Bp = _round_up(B, bt)
    out = pl.pallas_call(
        dnn_base_kernel,
        grid=(Bp // bt,),
        out_shape=jax.ShapeDtypeStruct((1, Bp), F32),
        in_specs=[_row_spec((Bp, D), bt),
                  _row_spec((Bp, D), bt),
                  _const_spec(w.shape),
                  _const_spec(b.shape)],
        out_specs=_out_row_spec(bt),
        compiler_params=_compiler_params(),
    )(_pad_rows(uid_emb, Bp), _pad_rows(iid_emb, Bp), w, b)
    return out[0, :B]


# --------------------------------------------------------------------------
# Kernel 2: meta stage
#   uid_lin = src.linear(uid_emb_src)
#   MetaNet: masked attention over ufea -> his_fea -> decoder -> (D,D) mapping
#   out = sum( bmm(uid_lin, mapping) * iid_emb, -1 )
# The decoder-2 + bmm is computed via an exact bilinear fold (see header).
# --------------------------------------------------------------------------
def meta_kernel(uid_src_ref, iid_ref, ufea_ref, seq_ref,
                wsrc_ref, bsrc_ref,
                w1_ref, b1_ref, w2_ref,
                w3_ref, b3_ref,
                e1_ref, e2_ref, wp_ref, b4_ref,
                out_ref, *, ew_dtype):
    Bt, S, D = ufea_ref.shape

    # src_model.linear on the source-domain user embedding
    uid_lin = _linear_nt(uid_src_ref[...], wsrc_ref[...], bsrc_ref[...])   # (Bt,D) f32

    ufea = ufea_ref[...]                                                   # (Bt,S,D) bf16

    # event_K: Linear(D,D) -> ReLU -> Linear(D,1, bias=False)
    h = _linear_nt(ufea.reshape(Bt * S, D), w1_ref[...], b1_ref[...])
    h = jnp.maximum(h, 0.0).reshape(Bt, S, D)
    w2 = w2_ref[...].astype(F32)                                           # (1,D)
    eK = jnp.sum(h * w2[0][None, None, :], axis=-1)                        # (Bt,S) f32

    # masked softmax over the sequence axis (seq id == 0 marks padding items)
    t = jnp.where(seq_ref[...] == 0, eK - 1e8, eK)
    m = jnp.max(t, axis=1, keepdims=True)
    e = jnp.exp(t - m)
    att = e * pl.reciprocal(jnp.sum(e, axis=1, keepdims=True), approx=True)  # (Bt,S)

    # his_fea = sum_s att * ufea  (bf16 elementwise on v6e/v7x, f32 on v5e)
    his = jnp.sum(att.astype(ew_dtype)[:, :, None] * ufea.astype(ew_dtype),
                  axis=1).astype(F32)                                      # (Bt,D)

    # decoder first layer: Linear(D, meta) -> ReLU
    d1 = jnp.maximum(_linear_nt(his, w3_ref[...], b3_ref[...]), 0.0)       # (Bt,M)

    # Bilinear fold of decoder-2 + bmm:
    #   outer[b, i*M+m] = uid_lin[b,i] * d1[b,m]
    #   uid_mapped[b,j] = sum_{i,m} outer * Wp[(i,m),j] + sum_i uid_lin*B4[i,j]
    lhs_a = jnp.dot(uid_lin.astype(BF16), e1_ref[...],
                    preferred_element_type=F32)                            # (Bt,D*M)
    lhs_b = jnp.dot(d1.astype(BF16), e2_ref[...],
                    preferred_element_type=F32)                            # (Bt,D*M)
    outer = (lhs_a.astype(ew_dtype) * lhs_b.astype(ew_dtype)).astype(BF16)
    uid_mapped = jnp.dot(outer, wp_ref[...], preferred_element_type=F32)   # (Bt,D)
    uid_mapped = uid_mapped + jnp.dot(uid_lin.astype(BF16), b4_ref[...],
                                      preferred_element_type=F32)

    prod = uid_mapped * iid_ref[...].astype(F32)
    _rowsum_to_lanes(out_ref, prod)


def meta_call(uid_src, iid_emb, ufea, seq,
              wsrc, bsrc, w1, b1, w2, w3, b3, e1, e2, wp, b4):
    cfg = _tpu_config()
    B, S, D = ufea.shape
    bt = _pick_tile(B, cfg["b_tile_meta"])
    Bp = _round_up(B, bt)
    kernel = functools.partial(meta_kernel, ew_dtype=cfg["ew_dtype"])
    out = pl.pallas_call(
        kernel,
        grid=(Bp // bt,),
        out_shape=jax.ShapeDtypeStruct((1, Bp), F32),
        in_specs=[_row_spec((Bp, D), bt),
                  _row_spec((Bp, D), bt),
                  _row_spec((Bp, S, D), bt),
                  _row_spec((Bp, S), bt),
                  _const_spec(wsrc.shape), _const_spec(bsrc.shape),
                  _const_spec(w1.shape), _const_spec(b1.shape), _const_spec(w2.shape),
                  _const_spec(w3.shape), _const_spec(b3.shape),
                  _const_spec(e1.shape), _const_spec(e2.shape),
                  _const_spec(wp.shape), _const_spec(b4.shape)],
        out_specs=_out_row_spec(bt),
        compiler_params=_compiler_params(),
    )(_pad_rows(uid_src, Bp), _pad_rows(iid_emb, Bp), _pad_rows(ufea, Bp),
      _pad_rows(seq, Bp),
      wsrc, bsrc, w1, b1, w2, w3, b3, e1, e2, wp, b4)
    return out[0, :B]


# --------------------------------------------------------------------------
# Kernel 3: test_map stage -> sum( mapping(src.linear(uid_emb)) * iid_emb, -1)
# --------------------------------------------------------------------------
def test_map_kernel(uid_ref, iid_ref, wsrc_ref, bsrc_ref, wmap_ref, out_ref):
    lin = _linear_nt(uid_ref[...], wsrc_ref[...], bsrc_ref[...])
    mapped = _linear_nt(lin, wmap_ref[...])                 # mapping has no bias
    prod = mapped * iid_ref[...].astype(F32)
    _rowsum_to_lanes(out_ref, prod)


def test_map_call(uid_emb, iid_emb, wsrc, bsrc, wmap):
    cfg = _tpu_config()
    B, D = uid_emb.shape
    bt = _pick_tile(B, cfg["b_tile"])
    Bp = _round_up(B, bt)
    out = pl.pallas_call(
        test_map_kernel,
        grid=(Bp // bt,),
        out_shape=jax.ShapeDtypeStruct((1, Bp), F32),
        in_specs=[_row_spec((Bp, D), bt), _row_spec((Bp, D), bt),
                  _const_spec(wsrc.shape), _const_spec(bsrc.shape),
                  _const_spec(wmap.shape)],
        out_specs=_out_row_spec(bt),
        compiler_params=_compiler_params(),
    )(_pad_rows(uid_emb, Bp), _pad_rows(iid_emb, Bp), wsrc, bsrc, wmap)
    return out[0, :B]


# --------------------------------------------------------------------------
# Kernel 4: train_map stage -> (mapping(src.linear(uid_src)), tgt.linear(uid_tgt))
# Packed into a single (Bp, 2*D) output (one store stream instead of two).
# --------------------------------------------------------------------------
def train_map_kernel(uid_src_ref, uid_tgt_ref, wsrc_ref, bsrc_ref, wmap_ref,
                     wtgt_ref, btgt_ref, out_ref):
    D = uid_src_ref.shape[1]
    src_lin = _linear_nt(uid_src_ref[...], wsrc_ref[...], bsrc_ref[...])
    src_map = _linear_nt(src_lin, wmap_ref[...])            # mapping has no bias
    tgt_lin = _linear_nt(uid_tgt_ref[...], wtgt_ref[...], btgt_ref[...])
    out_ref[:, :D] = src_map
    out_ref[:, D:] = tgt_lin


def train_map_call(uid_src, uid_tgt, wsrc, bsrc, wmap, wtgt, btgt):
    cfg = _tpu_config()
    B, D = uid_src.shape
    bt = _pick_tile(B, cfg["b_tile"])
    Bp = _round_up(B, bt)
    out = pl.pallas_call(
        train_map_kernel,
        grid=(Bp // bt,),
        out_shape=jax.ShapeDtypeStruct((Bp, 2 * D), F32),
        in_specs=[_row_spec((Bp, D), bt), _row_spec((Bp, D), bt),
                  _const_spec(wsrc.shape), _const_spec(bsrc.shape),
                  _const_spec(wmap.shape), _const_spec(wtgt.shape),
                  _const_spec(btgt.shape)],
        out_specs=_row_spec((Bp, 2 * D), bt),
        compiler_params=_compiler_params(),
    )(_pad_rows(uid_src, Bp), _pad_rows(uid_tgt, Bp),
      wsrc, bsrc, wmap, wtgt, btgt)
    return out[:B, :D], out[:B, D:]


# --------------------------------------------------------------------------
# Model wrapper (parameters + stage dispatch); gathers stay in plain JAX.
# --------------------------------------------------------------------------
class DNNBasedModelPallas:
    def __init__(self, uid_all, iid_all, num_fields, emb_dim, meta_dim, key):
        self.num_fields = num_fields
        self.emb_dim = emb_dim
        self.meta_dim = meta_dim
        ks = jax.random.split(key, 20)
        n = lambda k, s: (0.05 * jax.random.normal(k, s)).astype(BF16)

        def make_base(k0, k1, k2, k3):
            return dict(
                uid_emb=n(k0, (uid_all, emb_dim)),
                iid_emb=n(k1, (iid_all + 1, emb_dim)),
                w=n(k2, (emb_dim, emb_dim)),       # torch Linear weight layout (out,in)
                b=n(k3, (1, emb_dim)),
            )

        self.src = make_base(*ks[0:4])
        self.tgt = make_base(*ks[4:8])
        self.aug = make_base(*ks[8:12])
        # MetaNet params (torch layouts)
        self.ek_w1 = n(ks[12], (emb_dim, emb_dim))
        self.ek_b1 = n(ks[13], (1, emb_dim))
        self.ek_w2 = n(ks[14], (1, emb_dim))                  # Linear(D,1,bias=False)
        self.dec_w1 = n(ks[15], (meta_dim, emb_dim))
        self.dec_b1 = n(ks[16], (1, meta_dim))
        self.dec_w2 = n(ks[17], (emb_dim * emb_dim, meta_dim))
        self.dec_b2 = n(ks[18], (1, emb_dim * emb_dim))
        # mapping Linear(D, D, bias=False)
        self.map_w = n(ks[19], (emb_dim, emb_dim))

        # --- Bilinear fold of decoder-2 + bmm (exact reindexing, done once) ---
        #   Wp[(i*M+m), j] = dec_w2[i*D+j, m]     B4[i, j] = dec_b2[i*D+j]
        D, M = emb_dim, meta_dim
        self.dec_wp = jnp.transpose(self.dec_w2.reshape(D, D, M),
                                    (0, 2, 1)).reshape(D * M, D)          # (D*M, D) bf16
        self.dec_b4 = self.dec_b2.reshape(D, D)                           # (D, D)   bf16
        # Lane-expansion 0/1 constants: outer[b, i*M+m] = uid_lin[b,i] * d1[b,m]
        k_idx = jnp.arange(D * M)
        self.e1 = (jnp.arange(D)[:, None] == (k_idx[None, :] // M)).astype(BF16)  # (D, D*M)
        self.e2 = (jnp.arange(M)[:, None] == (k_idx[None, :] % M)).astype(BF16)   # (M, D*M)

    def __call__(self, x, stage):
        if stage == 'train_src':
            p = self.src
            return dnn_base_call(p['uid_emb'][x[:, 0]], p['iid_emb'][x[:, 1]],
                                 p['w'], p['b'])
        elif stage in ('train_tgt', 'test_tgt'):
            p = self.tgt
            return dnn_base_call(p['uid_emb'][x[:, 0]], p['iid_emb'][x[:, 1]],
                                 p['w'], p['b'])
        elif stage in ('train_aug', 'test_aug'):
            p = self.aug
            return dnn_base_call(p['uid_emb'][x[:, 0]], p['iid_emb'][x[:, 1]],
                                 p['w'], p['b'])
        elif stage in ('test_meta', 'train_meta'):
            iid_emb = self.tgt['iid_emb'][x[:, 1]]            # (B,D) bf16
            uid_src = self.src['uid_emb'][x[:, 0]]            # (B,D) bf16 (pre-linear)
            seq = x[:, 2:].astype(jnp.int32)                  # (B,S) int32
            ufea = self.src['iid_emb'][seq]                   # (B,S,D) bf16
            # TODO(synk): ufea gather stays in XLA (see header note).
            return meta_call(uid_src, iid_emb, ufea, seq,
                             self.src['w'], self.src['b'],
                             self.ek_w1, self.ek_b1, self.ek_w2,
                             self.dec_w1, self.dec_b1,
                             self.e1, self.e2, self.dec_wp, self.dec_b4)
        elif stage == 'train_map':
            uid_src = self.src['uid_emb'][x]                  # x is (B,) of user ids
            uid_tgt = self.tgt['uid_emb'][x]
            return train_map_call(uid_src, uid_tgt,
                                  self.src['w'], self.src['b'], self.map_w,
                                  self.tgt['w'], self.tgt['b'])
        elif stage == 'test_map':
            uid_emb = self.src['uid_emb'][x[:, 0]]
            iid_emb = self.tgt['iid_emb'][x[:, 1]]
            return test_map_call(uid_emb, iid_emb,
                                 self.src['w'], self.src['b'], self.map_w)
        else:
            raise ValueError(stage)


if __name__ == "__main__":
    uid_all, iid_all = 32, 64
    num_fields, emb_dim, meta_dim = 2, 32, 16
    B, S = 8, 8

    key = jax.random.PRNGKey(0)
    k_model, k_u, k_i, k_seq, k_map = jax.random.split(key, 5)

    model = DNNBasedModelPallas(uid_all, iid_all, num_fields, emb_dim, meta_dim, k_model)

    uid_col = jax.random.randint(k_u, (B, 1), 0, uid_all, dtype=jnp.int32)
    iid_col = jax.random.randint(k_i, (B, 1), 0, iid_all + 1, dtype=jnp.int32)
    seq_cols = jax.random.randint(k_seq, (B, S), 0, iid_all + 1, dtype=jnp.int32)
    seq_cols = seq_cols.at[:, -2:].set(0)        # exercise the padding mask
    x = jnp.concatenate([uid_col, iid_col, seq_cols], axis=1)   # (B, 2+S) int32

    # DNNBase stage (src / tgt / aug share the same kernel)
    out_src = jax.block_until_ready(model(x, 'train_src'))
    assert out_src.shape == (B,) and out_src.dtype == jnp.float32

    # Meta stage (MetaNet attention + folded decoder/bmm + dot product)
    out_meta = jax.block_until_ready(model(x, 'test_meta'))
    assert out_meta.shape == (B,)

    # Mapping stages
    xu = jax.random.randint(k_map, (B,), 0, uid_all, dtype=jnp.int32)
    src_emb, tgt_emb = jax.block_until_ready(model(xu, 'train_map'))
    assert src_emb.shape == (B, emb_dim) and tgt_emb.shape == (B, emb_dim)
    out_map = jax.block_until_ready(model(x, 'test_map'))
    assert out_map.shape == (B,)

    print("KERNEL_OK")
</pallas_src>

<mosaic_0001>
module attributes {stable_mosaic.version = 11 : i64} {
  func.func @dnn_base_kernel(%arg0: i32, %arg1: memref<128x32xbf16, #tpu.memory_space<vmem>>, %arg2: memref<128x32xbf16, #tpu.memory_space<vmem>>, %arg3: memref<32x32xbf16, #tpu.memory_space<vmem>>, %arg4: memref<1x32xbf16, #tpu.memory_space<vmem>>, %arg5: memref<1x128xf32, #tpu.memory_space<vmem>>) attributes {dimension_semantics = [#tpu.dimension_semantics<parallel>], iteration_bounds = array<i64: 1>, scalar_prefetch = 0 : i64, scratch_operands = 0 : i64, tpu.core_type = #tpu.core_type<tc>, window_params = [{transform_indices = @transform_0, window_bounds = array<i64: 128, 32>}, {transform_indices = @transform_1, window_bounds = array<i64: 128, 32>}, {pipeline_mode = #tpu.pipeline_mode<synchronous>, transform_indices = @transform_2, window_bounds = array<i64: 32, 32>}, {pipeline_mode = #tpu.pipeline_mode<synchronous>, transform_indices = @transform_3, window_bounds = array<i64: 1, 32>}, {transform_indices = @transform_4, window_bounds = array<i64: 1, 128>}]} {
    %c0 = arith.constant 0 : index
    %c0_0 = arith.constant 0 : index
    %0 = vector.load %arg1[%c0, %c0_0] : memref<128x32xbf16, #tpu.memory_space<vmem>>, vector<128x32xbf16>
    %c0_1 = arith.constant 0 : index
    %c0_2 = arith.constant 0 : index
    %1 = vector.load %arg3[%c0_1, %c0_2] : memref<32x32xbf16, #tpu.memory_space<vmem>>, vector<32x32xbf16>
    %c0_3 = arith.constant 0 : index
    %c0_4 = arith.constant 0 : index
    %2 = vector.load %arg4[%c0_3, %c0_4] : memref<1x32xbf16, #tpu.memory_space<vmem>>, vector<1x32xbf16>
    %cst = arith.constant dense<0.000000e+00> : vector<128x32xf32>
    %3 = tpu.matmul %0, %1, %cst {dimension_numbers = #tpu.dot_dimension_numbers<[1], [1], [0], [0], [0, 0, 1, 0], [], []>} : vector<128x32xbf16>, vector<32x32xbf16>, vector<128x32xf32> -> vector<128x32xf32>
    %4 = arith.extf %2 : vector<1x32xbf16> to vector<1x32xf32>
    %5 = vector.broadcast %4 : vector<1x32xf32> to vector<128x32xf32>
    %6 = arith.addf %3, %5 : vector<128x32xf32>
    %c0_5 = arith.constant 0 : index
    %c0_6 = arith.constant 0 : index
    %7 = vector.load %arg2[%c0_5, %c0_6] : memref<128x32xbf16, #tpu.memory_space<vmem>>, vector<128x32xbf16>
    %8 = arith.extf %7 : vector<128x32xbf16> to vector<128x32xf32>
    %9 = arith.mulf %6, %8 : vector<128x32xf32>
    %cst_7 = arith.constant 1.000000e+00 : f32
    %10 = vector.broadcast %cst_7 : f32 to vector<1x32xf32>
    %cst_8 = arith.constant dense<0.000000e+00> : vector<1x128xf32>
    %11 = tpu.matmul %10, %9, %cst_8 {dimension_numbers = #tpu.dot_dimension_numbers<[1], [1], [0], [0], [0, 0, 1, 0], [], []>} : vector<1x32xf32>, vector<128x32xf32>, vector<1x128xf32> -> vector<1x128xf32>
    %c0_9 = arith.constant 0 : index
    %c0_10 = arith.constant 0 : index
    %12 = vector.load %arg5[%c0_9, %c0_10] : memref<1x128xf32, #tpu.memory_space<vmem>>, vector<1x128xf32>
    tpu.vector_store %arg5[%c0_9, %c0_10], %11 {strides = array<i32>} : memref<1x128xf32, #tpu.memory_space<vmem>>, vector<1x128xf32>,
    return
  }
  func.func @transform_0(%arg0: i32) -> (i32, i32) {
    %c0_i32 = arith.constant 0 : i32
    %c0_i32_0 = arith.constant 0 : i32
    return %arg0, %c0_i32 : i32, i32
  }
  func.func @transform_1(%arg0: i32) -> (i32, i32) {
    %c0_i32 = arith.constant 0 : i32
    %c0_i32_0 = arith.constant 0 : i32
    return %arg0, %c0_i32 : i32, i32
  }
  func.func @transform_2(%arg0: i32) -> (i32, i32) {
    %c0_i32 = arith.constant 0 : i32
    %c0_i32_0 = arith.constant 0 : i32
    %c0_i32_1 = arith.constant 0 : i32
    return %c0_i32, %c0_i32_0 : i32, i32
  }
  func.func @transform_3(%arg0: i32) -> (i32, i32) {
    %c0_i32 = arith.constant 0 : i32
    %c0_i32_0 = arith.constant 0 : i32
    %c0_i32_1 = arith.constant 0 : i32
    return %c0_i32, %c0_i32_0 : i32, i32
  }
  func.func @transform_4(%arg0: i32) -> (i32, i32) {
    %c0_i32 = arith.constant 0 : i32
    %c0_i32_0 = arith.constant 0 : i32
    return %c0_i32, %arg0 : i32, i32
  }
}

</mosaic_0001>

<bundles_post_ra>
// kernel: tpu_custom_call.1
= control target key start
LH: loop header
LB: loop body
LE: loop exit
PB: predicated region body
PF: predicated region fallthrough
CT: control target
= control target key end

     0   :  { %vm95_vm0 = vcmask 261120   ;;  %s775_s0 = inlined_call_operand.vmem [shape: bf16[128,32], index: 0, kind: input, shape index: {}]   ;;  %s776_s1 = inlined_call_operand.vmem [shape: bf16[128,32], index: 1, kind: input, shape index: {}]   ;;  %s777_s2 = inlined_call_operand.vmem [shape: bf16[32,32], index: 2, kind: input, shape index: {}]   ;;  %s778_s3 = inlined_call_operand.vmem [shape: bf16[1,32], index: 3, kind: input, shape index: {}]   ;;  %s779_s4 = inlined_call_operand.hbm [shape: f32[1,128], index: 4, kind: output, shape index: {}]  }
   0x1   :  { %v569_v0 = vld [vmem:[%s777_s2 + $0x8] sm:$0xff]   ;;  %v570_v1 = vld [vmem:[%s777_s2] sm:$0xff]  }
   0x2   :  { %563 = vmatprep.subr.msk.bf16.mxu0 %vm95_vm0, %v569_v0  ;;  %v124_v2 = vsel %vm95_vm0, %v569_v0, 0  ;;  %v571_v3 = vld [vmem:[%s775_s0] sm:$0xff]   ;;  %v121_v4 = vsel %vm95_vm0, %v570_v1, 0 }
   0x3   :  { %509 = vmatpush3.bf16.xpose.msra.mxu0 %v124_v2  ;;  %512 = vmatprep.mubr.msk.bf16.mxu0 %vm95_vm0, %v571_v3 }
   0x4   :  { %564 = vmatprep.subr.msk.bf16.mxu0 %vm95_vm0, %v570_v1 }
   0x5   :  { %9 = vsyncpa [#allocation3], 0  ;;  %v572_v5 = vld [vmem:[%s775_s0 + $0x8] sm:$0xff]   ;;  %v573_v6 = vld [vmem:[%s775_s0 + $0x10] sm:$0xff]   ;;  %v601_v12 = vmov 0.0   ;;  %vm602_vm1 = vmmov 0   ;;  %v41_v21 = vlaneseq }
   0x6   :  { %v574_v7 = vld [vmem:[%s775_s0 + $0x18] sm:$0xff]   ;;  %v575_v8 = vld [vmem:[%s775_s0 + $0x20] sm:$0xff]   ;;  %v576_v9 = vld [vmem:[%s775_s0 + $0x28] sm:$0xff]   ;;  %528 = vmatprep.subr.mxu1 %v601_v12  ;;  %560 = vmatprep.mubr.msk.f32.mxu1 %vm602_vm1, %v601_v12 }
   0x7   :  { %v577_v10 = vld [vmem:[%s775_s0 + $0x30] sm:$0xff]   ;;  %v578_v11 = vld [vmem:[%s775_s0 + $0x38] sm:$0xff]   ;;  %v42_v24 = vshrl.u32 %v41_v21, 7  ;;  %v39_v25 = vld [vmem:[%s778_s3] sm:$0x1] }
   0x8   :  { %v40_v28 = vunpack.c.l.bf16 %v39_v25  ;;  %v480_v31 = vld [vmem:[%s776_s1 + $0x38] sm:$0xff]   ;;  %v479_v41 = vld [vmem:[%s776_s1 + $0x30] sm:$0xff]   ;;  %v478_v48 = vld [vmem:[%s776_s1 + $0x28] sm:$0xff]  }
   0x9   :  { %v43_v29 = vsub.s32 0, %v42_v24  ;;  %v473_v34 = vunpack.c.h.bf16 %v480_v31  ;;  %v472_v38 = vunpack.c.l.bf16 %v480_v31  ;;  %v469_v44 = vunpack.c.h.bf16 %v479_v41  ;;  %v477_v55 = vld [vmem:[%s776_s1 + $0x20] sm:$0xff]   ;;  %v476_v62 = vld [vmem:[%s776_s1 + $0x18] sm:$0xff]  }
   0xa   :  { %v468_v46 = vunpack.c.l.bf16 %v479_v41  ;;  %v465_v50 = vunpack.c.h.bf16 %v478_v48  ;;  %v464_v53 = vunpack.c.l.bf16 %v478_v48  ;;  %v461_v58 = vunpack.c.h.bf16 %v477_v55  ;;  %v443_v24 = vld [vmem:[%s776_s1] sm:$0xff]  }
   0xb   :  { %511 = vmatpush3.bf16.xpose.msra.mxu0 %v121_v4  ;;  %v694_v33 = vrot.slane %v40_v28, %v43_v29  ;;  %v460_v60 = vunpack.c.l.bf16 %v477_v55  ;;  %v457_v0 = vunpack.c.h.bf16 %v476_v62  ;;  %v456_v3 = vunpack.c.l.bf16 %v476_v62 }
  0x12   :  { %513 = vmatmul.mubr.msk.bf16.vlgmr.msra.gmra.mxu0 %vm95_vm0, %v572_v5  ;;  %v475_v5 = vld [vmem:[%s776_s1 + $0x10] sm:$0xff]  }
  0x13   :  { %516 = vmatprep.mubr.msk.bf16.mxu0 %vm95_vm0, %v573_v6 }
  0x1a   :  { %517 = vmatmul.mubr.msk.bf16.gmra.mxu0 %vm95_vm0, %v574_v7 }
  0x1b   :  { %520 = vmatprep.mubr.msk.bf16.mxu0 %vm95_vm0, %v575_v8  ;;  %v453_v8 = vunpack.c.h.bf16 %v475_v5 }
  0x22   :  { %521 = vmatmul.mubr.msk.bf16.gmra.mxu0 %vm95_vm0, %v576_v9 }
  0x23   :  { %524 = vmatprep.mubr.msk.bf16.mxu0 %vm95_vm0, %v577_v10  ;;  %v452_v10 = vunpack.c.l.bf16 %v475_v5 }
  0x2a   :  { %525 = vmatmul.mubr.msk.bf16.gmra.mxu0 %vm95_vm0, %v578_v11 }
  0xd2   :  { %v674_v13 = vpop.f32.mrf.mxu0 }
  0xd4   :  { %v676_v14 = vpop.f32.mrf.mxu0 }
  0xd6   :  { %v678_v15 = vpop.f32.mrf.mxu0 }
  0xd8   :  { %v680_v16 = vpop.f32.mrf.mxu0 }
  0xd9   :  { %v164_v25 = vadd.f32 %v680_v16, %v694_v33 }
  0xda   :  { %v682_v17 = vpop.f32.mrf.mxu0 }
  0xdb   :  { %v185_v2 = vadd.f32 %v682_v17, %v694_v33  ;;  %v474_v17 = vld [vmem:[%s776_s1 + $0x8] sm:$0xff]   ;;  %s604_s1 = smov [#allocation2]  }
  0xdc   :  { %v684_v18 = vpop.f32.mrf.mxu0  ;;  %s399_s23 = sshll.u32 %s604_s1, 4  ;;  %s400_s23 = int_to_ptr.vmem [resolvable:$true] %s399_s23 }
  0xdd   :  { %v261_v6 = vmul.f32 %v456_v3, %v185_v2  ;;  %v177_v9 = vadd.f32 %v684_v18, %v694_v33  ;;  %v169_v18 = vadd.f32 %v674_v13, %v694_v33  ;;  %v161_v13 = vadd.f32 %v676_v14, %v694_v33  ;;  %s579_s24 = scalar_lea.vmem %s400_s23, 16  ;;  %s583_s25 = scalar_lea.vmem %s400_s23, 32 }
  0xde   :  { %v519_v19 = vpop.f32.mrf.mxu0  ;;  %p580_p0 = scmp.ne.s32.totalorder %s400_s23, %s579_s24  ;;  %p584_p1 = scmp.lt.s32.totalorder %s400_s23, %s400_s23 }
  0xdf   :  { %v188_v63 = vadd.f32 %v519_v19, %v694_v33  ;;  %v172_v19 = vadd.f32 %v678_v15, %v694_v33  ;;  %v259_v21 = vmul.f32 %v452_v10, %v177_v9  ;;  %p585_p2 = scmp.lt.s32.totalorder %s583_s25, %s579_s24 }
  0xe0   :  { %v686_v20 = vpop.f32.mrf.mxu0 }
  0xe1   :  { %v262_v4 = vmul.f32 %v457_v0, %v188_v63  ;;  %v180_v7 = vadd.f32 %v686_v20, %v694_v33  ;;  %v449_v20 = vunpack.c.h.bf16 %v474_v17  ;;  %p586_p3 = por %p585_p2, %p584_p1 }
  0xe2   :  { %v522_v22 = vpop.f32.mrf.mxu0 }
  0xe3   :  { %v201_v52 = vadd.f32 %v522_v22, %v694_v33  ;;  %v260_v11 = vmul.f32 %v453_v8, %v180_v7  ;;  %v448_v22 = vunpack.c.l.bf16 %v474_v17  ;;  %p587_p4 = pnand %p586_p3, %p580_p0 }
  0xe4   :  { %v192_v23 = vpop.f32.mrf.mxu0 }
  0xe5   :  { %v265_v56 = vmul.f32 %v464_v53, %v201_v52  ;;  %v193_v59 = vadd.f32 %v192_v23, %v694_v33  ;;  %v258_v23 = vmul.f32 %v449_v20, %v172_v19  ;;  %v257_v15 = vmul.f32 %v448_v22, %v169_v18 }
  0xe6   :  { %v523_v26 = vpop.f32.mrf.mxu0 }
  0xe7   :  { %v204_v49 = vadd.f32 %v523_v26, %v694_v33  ;;  %v263_v1 = vmul.f32 %v460_v60, %v193_v59  ;;  %v445_v26 = vunpack.c.h.bf16 %v443_v24 }
  0xe8   :  { %v195_v27 = vpop.f32.mrf.mxu0 }
  0xe9   :  { %v266_v54 = vmul.f32 %v465_v50, %v204_v49  ;;  %v196_v57 = vadd.f32 %v195_v27, %v694_v33  ;;  %v444_v27 = vunpack.c.l.bf16 %v443_v24  ;;  %v256_v28 = vmul.f32 %v445_v26, %v164_v25 }
  0xea   :  { %v526_v30 = vpop.f32.mrf.mxu0 }
  0xeb   :  { %v217_v37 = vadd.f32 %v526_v30, %v694_v33  ;;  %v264_v61 = vmul.f32 %v461_v58, %v196_v57  ;;  %v255_v29 = vmul.f32 %v444_v27, %v161_v13  ;;  %v603_v30 = vmov 1.0  }
  0xec   :  { %v208_v32 = vpop.f32.mrf.mxu0 }
  0xed   :  { %v269_v42 = vmul.f32 %v472_v38, %v217_v37  ;;  %v209_v45 = vadd.f32 %v208_v32, %v694_v33 }
  0xee   :  { %v527_v35 = vpop.f32.mrf.mxu0 }
  0xef   :  { %v220_v36 = vadd.f32 %v527_v35, %v694_v33  ;;  %v267_v51 = vmul.f32 %v468_v46, %v209_v45 }
  0xf0   :  { %v211_v40 = vpop.f32.mrf.mxu0 }
  0xf1   :  { %v270_v39 = vmul.f32 %v473_v34, %v220_v36  ;;  %v212_v43 = vadd.f32 %v211_v40, %v694_v33 }
  0xf3   :  { %529 = vmatpush3.xpose.msk.msra.mxu1 %vm95_vm0, %v270_v39  ;;  %v268_v47 = vmul.f32 %v469_v44, %v212_v43 }
  0xf4   :  { %530 = vmatprep.subr.mxu1 %v601_v12 }
  0xf7   :  { %531 = vmatpush3.xpose.msk.msra.mxu1 %vm95_vm0, %v269_v42 }
  0xf8   :  { %532 = vmatprep.subr.mxu1 %v601_v12 }
  0xfb   :  { %533 = vmatpush3.xpose.msk.msra.mxu1 %vm95_vm0, %v268_v47 }
  0xfc   :  { %534 = vmatprep.subr.mxu1 %v601_v12 }
  0xff   :  { %535 = vmatpush3.xpose.msk.msra.mxu1 %vm95_vm0, %v267_v51 }
 0x100   :  { %536 = vmatprep.subr.mxu1 %v601_v12 }
 0x103   :  { %537 = vmatpush3.xpose.msk.msra.mxu1 %vm95_vm0, %v266_v54 }
 0x104   :  { %538 = vmatprep.subr.mxu1 %v601_v12 }
 0x107   :  { %539 = vmatpush3.xpose.msk.msra.mxu1 %vm95_vm0, %v265_v56 }
 0x108   :  { %540 = vmatprep.subr.mxu1 %v601_v12 }
 0x10b   :  { %541 = vmatpush3.xpose.msk.msra.mxu1 %vm95_vm0, %v264_v61 }
 0x10c   :  { %542 = vmatprep.subr.mxu1 %v601_v12 }
 0x10f   :  { %543 = vmatpush3.xpose.msk.msra.mxu1 %vm95_vm0, %v263_v1 }
 0x110   :  { %544 = vmatprep.subr.mxu1 %v601_v12 }
 0x113   :  { %545 = vmatpush3.xpose.msk.msra.mxu1 %vm95_vm0, %v262_v4 }
 0x114   :  { %546 = vmatprep.subr.mxu1 %v601_v12 }
 0x117   :  { %547 = vmatpush3.xpose.msk.msra.mxu1 %vm95_vm0, %v261_v6 }
 0x118   :  { %548 = vmatprep.subr.mxu1 %v601_v12 }
 0x11b   :  { %549 = vmatpush3.xpose.msk.msra.mxu1 %vm95_vm0, %v260_v11 }
 0x11c   :  { %550 = vmatprep.subr.mxu1 %v601_v12 }
 0x11f   :  { %551 = vmatpush3.xpose.msk.msra.mxu1 %vm95_vm0, %v259_v21 }
 0x120   :  { %552 = vmatprep.subr.mxu1 %v601_v12 }
 0x123   :  { %553 = vmatpush3.xpose.msk.msra.mxu1 %vm95_vm0, %v258_v23 }
 0x124   :  { %554 = vmatprep.subr.mxu1 %v601_v12 }
 0x127   :  { %555 = vmatpush3.xpose.msk.msra.mxu1 %vm95_vm0, %v257_v15 }
 0x128   :  { %556 = vmatprep.subr.mxu1 %v601_v12 }
 0x12b   :  { %557 = vmatpush3.xpose.msk.msra.mxu1 %vm95_vm0, %v256_v28 }
 0x12c   :  { %558 = vmatprep.subr.mxu1 %v601_v12 }
 0x12f   :  { %559 = vmatpush3.xpose.msk.msra.mxu1 %vm95_vm0, %v255_v29 }
 0x132   :  { %561 = vmatmul.mubr.msk.f32.vlgmr.msra.gmra.mxu1 %vm95_vm0, %v603_v30 }
 0x1f2   :  { %v388_v16 = vpop.f32.mrf.mxu1 }
 0x1f3   :  { %392 = vst [vmem:[#allocation2] sm:$0x1] %v388_v16 }
 0x1f4   :  { %v562_v31 = vpop.f32.mrf.mxu1 }
 0x1f5   :  { %590 = shalt.err (!%p587_p4)
}
 0x1f6   :  { %402 = dma.vmem_to_hbm [thread:$0]  %s400_s23, 16, %s779_s4, [#allocation3]  }
 0x1f7   :  { %599 = dma.done.wait [#allocation3], 16  }
 0x1f8   :  { %600 = vsyncadd [#allocation3], 4294967280 }
 0x1f9   :  { %406 = vsyncpa [#allocation3], 1 }

</bundles_post_ra>
